<compile_context>
chip_gen: v7x
topology: tpu7x:2x2x1
jax: 0.10.0
libtpu: 0.0.40
codegen_flags: <defaults>
</compile_context>

<pallas_src>
import functools

import jax
import jax.numpy as jnp
from jax.experimental import pallas as pl
from jax.experimental.pallas import tpu as pltpu


def _round_up(x, m):
    return ((x + m - 1) // m) * m


def _pick_tile_n(n, c, itemsize):
    """Pick the batch (lane) tile size.

    Target ~2 MiB of native-dtype logits per step (dtype-aware, so bf16/fp8
    inputs get proportionally larger tiles), bound the f32 working set so the
    scoped VMEM limit holds on every generation (v7x: 64 MiB physical), and
    keep >= 4 grid tiles when there is enough work so the 'parallel' grid axis
    can shard across v7x's two TensorCores.
    """
    n_pad128 = _round_up(max(n, 1), 128)
    c = max(c, 1)
    # ~2 MiB of native-dtype logits per tile.
    by_target = max(128, ((2 * 1024 * 1024) // (c * itemsize)) // 128 * 128)
    # ~8 f32 (C, tn) intermediates must stay within ~16 MiB of VMEM scratch.
    by_vmem = max(128, ((16 * 1024 * 1024) // (8 * c * 4)) // 128 * 128)
    tn = min(32768, by_target, by_vmem, n_pad128)
    if n_pad128 >= 4 * 128:
        tn = min(tn, max(128, (n_pad128 // 4) // 128 * 128))
    return max(128, tn)


def _focal_loss_kernel(*refs, gamma, epsilon, n_valid, tn, use_alpha,
                       emit_per_sample, emit_partials, needs_mask):
    it = iter(refs)
    logits_ref = next(it)                              # (C, tn)  native dtype
    targets_ref = next(it)                             # (1, tn)  int32
    alpha_ref = next(it) if use_alpha else None        # (C, 1)   f32
    sums_ref = next(it) if emit_partials else None     # (1, 128) f32
    loss_ref = next(it) if emit_per_sample else None   # (1, tn)  f32

    x = logits_ref[...].astype(jnp.float32)            # cast in-register
    t = targets_ref[...]                               # (1, tn)
    C = x.shape[0]

    # Numerically-stable log-softmax over the class (sublane) axis.
    m = jnp.max(x, axis=0, keepdims=True)                            # (1, tn)
    shifted = x - m                                                  # (C, tn)
    lse = jnp.log(jnp.sum(jnp.exp(shifted), axis=0, keepdims=True))  # (1, tn)

    # Select the target-class logit (and alpha) with a single broadcast compare.
    class_idx = jax.lax.broadcasted_iota(jnp.int32, (C, 1), 0)       # (C, 1)
    sel = class_idx == t                                             # (C, tn)
    log_p_t = jnp.sum(jnp.where(sel, shifted, 0.0),
                      axis=0, keepdims=True) - lse                   # (1, tn)

    p_t = jnp.exp(log_p_t)
    p_t_stable = jnp.clip(p_t, epsilon, 1.0 - epsilon)
    one_minus = 1.0 - p_t_stable

    g = float(gamma)
    if g == 0.0:
        mod = jnp.ones_like(one_minus)
    elif g.is_integer() and 1.0 <= g <= 4.0:
        # Integer gamma: repeated multiply instead of pow (no EUP exp/log).
        mod = one_minus
        for _ in range(int(g) - 1):
            mod = mod * one_minus
    else:
        mod = one_minus ** g

    loss = -mod * log_p_t                                            # (1, tn)
    if use_alpha:
        alpha_t = jnp.sum(jnp.where(sel, alpha_ref[...], 0.0),
                          axis=0, keepdims=True)                     # (1, tn)
        loss = alpha_t * loss

    if emit_per_sample:
        # Lane-dense store; OOB columns of the last block are discarded by
        # Pallas, so no masking is required here.
        loss_ref[...] = loss

    if emit_partials:
        if needs_mask:
            # Zero out garbage columns of the (non-dividing) last block so
            # they don't pollute the sum.
            col = pl.program_id(0) * tn + jax.lax.broadcasted_iota(
                jnp.int32, (1, tn), 1)
            loss = jnp.where(col < n_valid, loss, 0.0)

        # Per-lane partial sums: interleaved accumulators + pairwise tree so
        # the 4 VALU slots can co-issue (no long serial dependency chain), and
        # no cross-lane (XLU) reduction inside the kernel.
        n_chunks = tn // 128
        n_acc = min(8, n_chunks)
        accs = [jnp.zeros((1, 128), jnp.float32) for _ in range(n_acc)]
        for k in range(n_chunks):
            accs[k % n_acc] = accs[k % n_acc] + loss[:, k * 128:(k + 1) * 128]
        while len(accs) > 1:
            nxt = []
            for i in range(0, len(accs), 2):
                if i + 1 < len(accs):
                    nxt.append(accs[i] + accs[i + 1])
                else:
                    nxt.append(accs[i])
            accs = nxt
        sums_ref[...] = accs[0]


def focal_loss(inputs, targets, alpha=None, gamma=2.0, reduction="mean",
               epsilon=1e-07, tile_n=None):
    """inputs: (N, C) logits (any float dtype); targets: (N,) int class ids."""
    if reduction not in ("none", "mean", "sum"):
        raise ValueError(
            f"Invalid reduction type: {reduction}. Choose from 'none', 'mean', 'sum'.")

    N, C = inputs.shape
    use_alpha = alpha is not None
    if use_alpha:
        alpha = jnp.asarray(alpha, jnp.float32)
        if alpha.shape[0] != C:
            raise ValueError(
                f"Alpha tensor size ({alpha.shape[0]}) must match number of classes ({C})")
        alpha_col = alpha.reshape(C, 1)

    itemsize = jnp.dtype(inputs.dtype).itemsize
    if tile_n is not None:
        if tile_n % 128 != 0:
            raise ValueError("tile_n must be a multiple of 128")
        tn = int(tile_n)
    else:
        tn = _pick_tile_n(N, C, itemsize)
    num_tiles = pl.cdiv(N, tn)
    needs_mask = (N % tn) != 0

    # Lane-dense layout: batch on lanes, classes on sublanes. No padding pass:
    # the non-dividing last block is handled by the in-kernel mask.
    logits_t = jnp.transpose(inputs)                   # (C, N), native dtype
    targets_row = targets.astype(jnp.int32).reshape(1, N)

    args = [logits_t, targets_row]
    in_specs = [
        pl.BlockSpec((C, tn), lambda j: (0, j)),       # logits tile (full C)
        pl.BlockSpec((1, tn), lambda j: (0, j)),       # targets row tile
    ]
    if use_alpha:
        args.append(alpha_col)
        in_specs.append(pl.BlockSpec((C, 1), lambda j: (0, 0)))   # tiny, resident

    emit_per_sample = (reduction == "none")
    emit_partials = not emit_per_sample

    out_shape = []
    out_specs = []
    if emit_partials:
        out_shape.append(jax.ShapeDtypeStruct((1, num_tiles * 128), jnp.float32))
        out_specs.append(pl.BlockSpec((1, 128), lambda j: (0, j)))
    if emit_per_sample:
        out_shape.append(jax.ShapeDtypeStruct((1, N), jnp.float32))
        out_specs.append(pl.BlockSpec((1, tn), lambda j: (0, j)))

    # Scoped VMEM: double-buffered native-dtype input + ~8 f32 (C, tn)
    # intermediates; clamp to v7x's 64 MiB physical VMEM.
    est = int(C * tn * (2 * itemsize + 8 * 4)) + 64 * tn
    vmem_limit = min(max(32 * 1024 * 1024, int(est * 5 // 4)), 64 * 1024 * 1024)

    kernel = functools.partial(
        _focal_loss_kernel,
        gamma=float(gamma), epsilon=float(epsilon), n_valid=N, tn=tn,
        use_alpha=use_alpha, emit_per_sample=emit_per_sample,
        emit_partials=emit_partials, needs_mask=needs_mask)

    outs = pl.pallas_call(
        kernel,
        out_shape=tuple(out_shape),
        grid_spec=pltpu.PrefetchScalarGridSpec(
            num_scalar_prefetch=0,
            grid=(num_tiles,),
            in_specs=in_specs,
            out_specs=out_specs,
        ),
        compiler_params=pltpu.CompilerParams(
            # No resident accumulator -> the single grid axis can shard across
            # v7x's two TensorCores.
            dimension_semantics=("parallel",),
            vmem_limit_bytes=vmem_limit,
        ),
    )(*args)

    if reduction == "none":
        return outs[0][0]                              # (N,) per-sample loss
    total = jnp.sum(outs[0])
    if reduction == "sum":
        return total
    return total / N                                   # mean over the true N


def _focal_loss_ref(inputs, targets, alpha, gamma, epsilon, reduction="mean"):
    """Pure-JAX reference mirroring the PyTorch module."""
    log_probs = jax.nn.log_softmax(inputs.astype(jnp.float32), axis=1)
    log_p_t = jnp.take_along_axis(log_probs, targets[:, None], axis=1)[:, 0]
    p_t = jnp.exp(log_p_t)
    p_t_stable = jnp.clip(p_t, epsilon, 1.0 - epsilon)
    loss = -((1.0 - p_t_stable) ** gamma) * log_p_t
    if alpha is not None:
        loss = alpha[targets] * loss
    if reduction == "mean":
        return loss.mean()
    if reduction == "sum":
        return loss.sum()
    return loss


if __name__ == "__main__":
    key = jax.random.PRNGKey(0)
    k1, k2, k3, k4 = jax.random.split(key, 4)

    # Case 1: N deliberately NOT a multiple of the tile -> exercises the
    # non-dividing last block + in-kernel masking path.
    N, C = 200, 8
    logits = jax.random.normal(k1, (N, C), dtype=jnp.float32) * 2.0
    targets = jax.random.randint(k2, (N,), 0, C, dtype=jnp.int32)
    alpha = jnp.linspace(0.25, 1.0, C, dtype=jnp.float32)

    out_mean = jax.block_until_ready(
        focal_loss(logits, targets, alpha=alpha, gamma=2.0, reduction="mean"))
    out_sum = jax.block_until_ready(
        focal_loss(logits, targets, alpha=None, gamma=2.0, reduction="sum"))
    out_none = jax.block_until_ready(
        focal_loss(logits, targets, alpha=alpha, gamma=2.0, reduction="none"))

    ref_mean = _focal_loss_ref(logits, targets, alpha, 2.0, 1e-07, "mean")
    ref_sum = _focal_loss_ref(logits, targets, None, 2.0, 1e-07, "sum")
    ref_none = _focal_loss_ref(logits, targets, alpha, 2.0, 1e-07, "none")

    assert jnp.allclose(out_mean, ref_mean, rtol=1e-5, atol=1e-6), (out_mean, ref_mean)
    assert jnp.allclose(out_sum, ref_sum, rtol=1e-5, atol=1e-5), (out_sum, ref_sum)
    assert jnp.allclose(out_none, ref_none, rtol=1e-5, atol=1e-6)

    # Case 2: multi-tile grid (exercises the 'parallel' axis / per-tile partials).
    N2, C2 = 1024, 8
    logits2 = jax.random.normal(k3, (N2, C2), dtype=jnp.float32) * 2.0
    targets2 = jax.random.randint(k4, (N2,), 0, C2, dtype=jnp.int32)

    out2 = jax.block_until_ready(
        focal_loss(logits2, targets2, alpha=alpha, gamma=2.0, reduction="mean"))
    ref2 = _focal_loss_ref(logits2, targets2, alpha, 2.0, 1e-07, "mean")
    assert jnp.allclose(out2, ref2, rtol=1e-5, atol=1e-6), (out2, ref2)

    print("KERNEL_OK")
</pallas_src>

<mosaic_0001>
module attributes {stable_mosaic.version = 11 : i64} {
  func.func @_focal_loss_kernel(%arg0: i32, %arg1: memref<8x256xf32, #tpu.memory_space<vmem>>, %arg2: memref<1x256xi32, #tpu.memory_space<vmem>>, %arg3: memref<8x1xf32, #tpu.memory_space<vmem>>, %arg4: memref<1x128xf32, #tpu.memory_space<vmem>>) attributes {dimension_semantics = [#tpu.dimension_semantics<parallel>], iteration_bounds = array<i64: 1>, scalar_prefetch = 0 : i64, scratch_operands = 0 : i64, tpu.core_type = #tpu.core_type<tc>, window_params = [{transform_indices = @transform_0, window_bounds = array<i64: 8, 256>}, {transform_indices = @transform_1, window_bounds = array<i64: 1, 256>}, {pipeline_mode = #tpu.pipeline_mode<synchronous>, transform_indices = @transform_2, window_bounds = array<i64: 8, 1>}, {transform_indices = @transform_3, window_bounds = array<i64: 1, 128>}]} {
    %c0 = arith.constant 0 : index
    %c0_0 = arith.constant 0 : index
    %0 = vector.load %arg1[%c0, %c0_0] : memref<8x256xf32, #tpu.memory_space<vmem>>, vector<8x256xf32>
    %c0_1 = arith.constant 0 : index
    %c0_2 = arith.constant 0 : index
    %1 = vector.load %arg2[%c0_1, %c0_2] : memref<1x256xi32, #tpu.memory_space<vmem>>, vector<1x256xi32>
    %cst = arith.constant dense<0xFF800000> : vector<256xf32>
    %2 = vector.multi_reduction <maximumf>, %0, %cst [0] : vector<8x256xf32> to vector<256xf32>
    %3 = vector.shape_cast %2 : vector<256xf32> to vector<1x256xf32>
    %4 = vector.broadcast %3 : vector<1x256xf32> to vector<8x256xf32>
    %5 = arith.subf %0, %4 : vector<8x256xf32>
    %6 = math.exp %5 : vector<8x256xf32>
    %cst_3 = arith.constant dense<0.000000e+00> : vector<256xf32>
    %7 = vector.multi_reduction <add>, %6, %cst_3 [0] : vector<8x256xf32> to vector<256xf32>
    %8 = vector.shape_cast %7 : vector<256xf32> to vector<1x256xf32>
    %9 = math.log %8 : vector<1x256xf32>
    %10 = tpu.iota {dimensions = array<i32: 0>} : vector<8x1xi32>
    %11 = vector.broadcast %10 : vector<8x1xi32> to vector<8x256xi32>
    %12 = vector.broadcast %1 : vector<1x256xi32> to vector<8x256xi32>
    %13 = arith.cmpi eq, %11, %12 : vector<8x256xi32>
    %cst_4 = arith.constant 0.000000e+00 : f32
    %14 = vector.broadcast %cst_4 : f32 to vector<8x256xf32>
    %15 = arith.select %13, %5, %14 : vector<8x256xi1>, vector<8x256xf32>
    %cst_5 = arith.constant dense<0.000000e+00> : vector<256xf32>
    %16 = vector.multi_reduction <add>, %15, %cst_5 [0] : vector<8x256xf32> to vector<256xf32>
    %17 = vector.shape_cast %16 : vector<256xf32> to vector<1x256xf32>
    %18 = arith.subf %17, %9 : vector<1x256xf32>
    %19 = math.exp %18 : vector<1x256xf32>
    %cst_6 = arith.constant 1.000000e-07 : f32
    %cst_7 = arith.constant 0.99999988 : f32
    %20 = vector.broadcast %cst_6 : f32 to vector<1x256xf32>
    %21 = arith.maximumf %20, %19 : vector<1x256xf32>
    %22 = vector.broadcast %cst_7 : f32 to vector<1x256xf32>
    %23 = arith.minimumf %22, %21 : vector<1x256xf32>
    %cst_8 = arith.constant 1.000000e+00 : f32
    %24 = vector.broadcast %cst_8 : f32 to vector<1x256xf32>
    %25 = arith.subf %24, %23 : vector<1x256xf32>
    %26 = arith.mulf %25, %25 : vector<1x256xf32>
    %cst_9 = arith.constant 0.000000e+00 : f32
    %27 = vector.broadcast %cst_9 : f32 to vector<1x256xf32>
    %28 = arith.subf %27, %26 : vector<1x256xf32>
    %29 = arith.mulf %28, %18 : vector<1x256xf32>
    %c0_10 = arith.constant 0 : index
    %c0_11 = arith.constant 0 : index
    %30 = vector.load %arg3[%c0_10, %c0_11] : memref<8x1xf32, #tpu.memory_space<vmem>>, vector<8x1xf32>
    %cst_12 = arith.constant 0.000000e+00 : f32
    %31 = vector.shape_cast %30 : vector<8x1xf32> to vector<8x1xf32>
    %32 = vector.broadcast %31 : vector<8x1xf32> to vector<8x256xf32>
    %33 = vector.broadcast %cst_12 : f32 to vector<8x256xf32>
    %34 = arith.select %13, %32, %33 : vector<8x256xi1>, vector<8x256xf32>
    %cst_13 = arith.constant dense<0.000000e+00> : vector<256xf32>
    %35 = vector.multi_reduction <add>, %34, %cst_13 [0] : vector<8x256xf32> to vector<256xf32>
    %36 = vector.shape_cast %35 : vector<256xf32> to vector<1x256xf32>
    %37 = arith.mulf %36, %29 : vector<1x256xf32>
    %c256_i32 = arith.constant 256 : i32
    %38 = arith.muli %arg0, %c256_i32 : i32
    %39 = tpu.iota {dimensions = array<i32: 1>} : vector<1x256xi32>
    %40 = vector.broadcast %38 : i32 to vector<1x256xi32>
    %41 = arith.addi %40, %39 : vector<1x256xi32>
    %c200_i32 = arith.constant 200 : i32
    %42 = vector.broadcast %c200_i32 : i32 to vector<1x256xi32>
    %43 = arith.cmpi slt, %41, %42 : vector<1x256xi32>
    %cst_14 = arith.constant 0.000000e+00 : f32
    %44 = vector.broadcast %cst_14 : f32 to vector<1x256xf32>
    %45 = arith.select %43, %37, %44 : vector<1x256xi1>, vector<1x256xf32>
    %cst_15 = arith.constant 0.000000e+00 : f32
    %46 = vector.broadcast %cst_15 : f32 to vector<1x128xf32>
    %cst_16 = arith.constant 0.000000e+00 : f32
    %47 = vector.broadcast %cst_16 : f32 to vector<1x128xf32>
    %48 = vector.extract_strided_slice %45 {offsets = [0, 0], sizes = [1, 128], strides = [1, 1]} : vector<1x256xf32> to vector<1x128xf32>
    %49 = arith.addf %46, %48 : vector<1x128xf32>
    %50 = vector.extract_strided_slice %45 {offsets = [0, 128], sizes = [1, 128], strides = [1, 1]} : vector<1x256xf32> to vector<1x128xf32>
    %51 = arith.addf %47, %50 : vector<1x128xf32>
    %52 = arith.addf %49, %51 : vector<1x128xf32>
    %c0_17 = arith.constant 0 : index
    %c0_18 = arith.constant 0 : index
    %53 = vector.load %arg4[%c0_17, %c0_18] : memref<1x128xf32, #tpu.memory_space<vmem>>, vector<1x128xf32>
    tpu.vector_store %arg4[%c0_17, %c0_18], %52 {strides = array<i32>} : memref<1x128xf32, #tpu.memory_space<vmem>>, vector<1x128xf32>,
    return
  }
  func.func @transform_0(%arg0: i32) -> (i32, i32) {
    %c0_i32 = arith.constant 0 : i32
    %c0_i32_0 = arith.constant 0 : i32
    return %c0_i32, %arg0 : i32, i32
  }
  func.func @transform_1(%arg0: i32) -> (i32, i32) {
    %c0_i32 = arith.constant 0 : i32
    %c0_i32_0 = arith.constant 0 : i32
    return %c0_i32, %arg0 : i32, i32
  }
  func.func @transform_2(%arg0: i32) -> (i32, i32) {
    %c0_i32 = arith.constant 0 : i32
    %c0_i32_0 = arith.constant 0 : i32
    %c0_i32_1 = arith.constant 0 : i32
    return %c0_i32, %c0_i32_0 : i32, i32
  }
  func.func @transform_3(%arg0: i32) -> (i32, i32) {
    %c0_i32 = arith.constant 0 : i32
    %c0_i32_0 = arith.constant 0 : i32
    return %c0_i32, %arg0 : i32, i32
  }
}

</mosaic_0001>

<bundles_post_ra>
// kernel: tpu_custom_call.1
= control target key start
LH: loop header
LB: loop body
LE: loop exit
PB: predicated region body
PF: predicated region fallthrough
CT: control target
= control target key end

     0   :  { %8 = vsyncpa [#allocation3], 0  ;;  %s283_s0 = inlined_call_operand.hbm [shape: f32[8,200], index: 0, kind: input, shape index: {}]   ;;  %s284_s1 = inlined_call_operand.vmem [shape: s32[1,200], index: 1, kind: input, shape index: {}]   ;;  %s285_s2 = inlined_call_operand.vmem [shape: f32[8,1], index: 2, kind: input, shape index: {}]   ;;  %s286_s3 = inlined_call_operand.hbm [shape: f32[1,128], index: 3, kind: output, shape index: {}]  }
   0x1   :  { %9 = vsyncpa [#allocation4], 0  ;;  %s224_s12 = smov [#allocation2]   ;;  %s176_s16 = scalar_lea.hbm %s283_s0, 256 }
   0x2   :  { %s16_s13 = sshll.u32 %s224_s12, 4  ;;  %p177_p0 = scmp.ne.s32.totalorder %s283_s0, %s176_s16  ;;  %s17_s13 = int_to_ptr.vmem [resolvable:$true] %s16_s13 }
   0x3   :  { %p180_p1 = scmp.lt.u32.totalorder %s176_s16, %s283_s0 }
   0x5   :  { %p182_p2 = pnand %p180_p1, %p177_p0 }
   0x7   :  { %185 = shalt.err (!%p182_p2)
}
   0x8   :  { %s186_s21 = scalar_lea.vmem %s17_s13, 256  ;;  %p191_p4 = scmp.lt.s32.totalorder %s17_s13, %s17_s13 }
   0x9   :  { %p187_p3 = scmp.ne.s32.totalorder %s17_s13, %s186_s21  ;;  %p192_p5 = scmp.lt.s32.totalorder %s186_s21, %s186_s21 }
   0xb   :  { %p193_p6 = por %p192_p5, %p191_p4 }
   0xd   :  { %p194_p7 = pnand %p193_p6, %p187_p3 }
   0xf   :  { %197 = shalt.err (!%p194_p7)
}
  0x10   :  { %19 = dma.hbm_to_vmem [thread:$0]  %s283_s0, 256, %s17_s13, [#allocation3]  }
  0x11   :  { %220 = dma.done.wait [#allocation3], 256  }
  0x12   :  { %221 = vsyncadd [#allocation3], 4294967040  ;;  %v225_v0 = vmov 0   ;;  %v108_v1 = vld [vmem:[%s285_s2] sm:$0xff]  ;;  %v28_v3 = vld [vmem:[#allocation2 + $0x8] sm:$0xff]  ;;  %v64_v20 = vlaneseq }
  0x13   :  { %163 = vset.pattern.permute.xlu0 %v225_v0  ;;  %v27_v2 = vld [vmem:[#allocation2] sm:$0xff]  ;;  %v36_v5 = vrot.slane %v28_v3, 4 }
  0x14   :  { %111 = vperm.xlu0 %163, %v108_v1   ;;  %v30_v4 = vrot.slane %v27_v2, 4  ;;  %v65_v23 = vshrl.u32 %v64_v20, 7  ;;  %v29_v28 = vld [vmem:[%s284_s1] sm:$0x3]  ;;  %s226_s1 = smov [#allocation5]  }
  0x15   :  { %v37_v7 = vmax.f32 %v28_v3, %v36_v5  ;;  %s151_s26 = sshll.u32 %s226_s1, 4  ;;  %s152_s26 = int_to_ptr.vmem [resolvable:$true] %s151_s26 }
  0x16   :  { %v31_v6 = vmax.f32 %v27_v2, %v30_v4  ;;  %v68_v26 = vsub.s32 0, %v65_v23  ;;  %v72_v27 = vsub.s32 1, %v65_v23  ;;  %s198_s27 = scalar_lea.vmem %s152_s26, 16  ;;  %s202_s28 = scalar_lea.vmem %s152_s26, 32 }
  0x17   :  { %v38_v9 = vrot.slane %v37_v7, 2  ;;  %p199_p8 = scmp.ne.s32.totalorder %s152_s26, %s198_s27  ;;  %p203_p9 = scmp.lt.s32.totalorder %s152_s26, %s152_s26 }
  0x18   :  { %v32_v8 = vrot.slane %v31_v6, 2  ;;  %v69_v31 = vrot.slane %v29_v28, %v68_v26  ;;  %v73_v33 = vrot.slane %v29_v28, %v72_v27  ;;  %p204_p10 = scmp.lt.s32.totalorder %s202_s28, %s198_s27 }
  0x19   :  { %v39_v11 = vmax.f32 %v37_v7, %v38_v9 }
  0x1a   :  { %v33_v10 = vmax.f32 %v31_v6, %v32_v8  ;;  %vm74_vm0 = vcmp.eq.s32.totalorder %v65_v23, %v69_v31  ;;  %vm75_vm1 = vcmp.eq.s32.totalorder %v65_v23, %v73_v33  ;;  %p205_p11 = por %p204_p10, %p203_p9 }
  0x1b   :  { %v40_v13 = vrot.slane %v39_v11, 1 }
  0x1c   :  { %v34_v12 = vrot.slane %v33_v10, 1  ;;  %p206_p12 = pnand %p205_p11, %p199_p8 }
  0x1d   :  { %v41_v15 = vmax.f32 %v39_v11, %v40_v13 }
  0x1e   :  { %v35_v14 = vmax.f32 %v33_v10, %v34_v12 }
  0x1f   :  { %v43_v17 = vsub.f32 %v28_v3, %v41_v15 }
  0x20   :  { %v42_v16 = vsub.f32 %v27_v2, %v35_v14 }
  0x21   :  { %v46_v19 = vmul.f32 1.442695, %v43_v17  ;;  %v77_v38 = vsel %vm75_vm1, %v43_v17, 0.0 }
  0x22   :  { %v44_v18 = vmul.f32 1.442695, %v42_v16  ;;  %v76_v37 = vsel %vm74_vm0, %v42_v16, 0.0  ;;  %v84_v42 = vrot.slane %v77_v38, 4  ;;  %v132_v16 = vand.u32 127, %v64_v20 }
  0x23   :  { %v78_v41 = vrot.slane %v76_v37, 4 }
  0x24   :  { %164 = vpow2.f32 %v44_v18  ;;  %v85_v46 = vadd.f32 %v84_v42, %v77_v38 }
  0x25   :  { %166 = vpow2.f32 %v46_v19  ;;  %v79_v45 = vadd.f32 %v78_v41, %v76_v37 }
  0x26   :  { %v86_v48 = vrot.slane %v85_v46, 2 }
  0x27   :  { %v80_v47 = vrot.slane %v79_v45, 2 }
  0x28   :  { %v87_v50 = vadd.f32 %v86_v48, %v85_v46 }
  0x29   :  { %v81_v49 = vadd.f32 %v80_v47, %v79_v45 }
  0x2a   :  { %v88_v53 = vrot.slane %v87_v50, 1 }
  0x2b   :  { %v82_v51 = vrot.slane %v81_v49, 1 }
  0x2c   :  { %v89_v58 = vadd.f32 %v88_v53, %v87_v50 }
  0x2d   :  { %v83_v56 = vadd.f32 %v82_v51, %v81_v49 }
  0x2e   :  { %v165_v21 = vpop.eup %164 }
  0x2f   :  { %v167_v22 = vpop.eup %166  ;;  %v48_v24 = vrot.slane %v165_v21, 4 }
  0x30   :  { %v54_v25 = vrot.slane %v167_v22, 4 }
  0x31   :  { %v49_v29 = vadd.f32 %v165_v21, %v48_v24 }
  0x32   :  { %v55_v30 = vadd.f32 %v167_v22, %v54_v25  ;;  %v133_v25 = vadd.s32 128, %v132_v16 }
  0x33   :  { %v50_v32 = vrot.slane %v49_v29, 2 }
  0x34   :  { %v56_v34 = vrot.slane %v55_v30, 2  ;;  %vm138_vm2 = vcmp.lt.s32.totalorder %v133_v25, 200 }
  0x35   :  { %v51_v35 = vadd.f32 %v50_v32, %v49_v29 }
  0x36   :  { %v57_v36 = vadd.f32 %v56_v34, %v55_v30 }
  0x37   :  { %v52_v39 = vrot.slane %v51_v35, 1 }
  0x38   :  { %v58_v40 = vrot.slane %v57_v36, 1 }
  0x39   :  { %v53_v43 = vadd.f32 %v52_v39, %v51_v35 }
  0x3a   :  { %v59_v44 = vadd.f32 %v58_v40, %v57_v36 }
  0x3b   :  { %168 = vlog2.f32 %v53_v43 }
  0x3c   :  { %170 = vlog2.f32 %v59_v44 }
  0x45   :  { %v169_v52 = vpop.eup %168 }
  0x46   :  { %v171_v54 = vpop.eup %170  ;;  %v61_v55 = vmul.f32 0.6931472, %v169_v52 }
  0x47   :  { %v63_v57 = vmul.f32 0.6931472, %v171_v54 }
  0x48   :  { %v90_v59 = vsub.f32 %v83_v56, %v61_v55 }
  0x49   :  { %v91_v60 = vsub.f32 %v89_v58, %v63_v57 }
  0x4a   :  { %v92_v61 = vmul.f32 1.442695, %v90_v59 }
  0x4b   :  { %v94_v62 = vmul.f32 1.442695, %v91_v60 }
  0x4c   :  { %172 = vpow2.f32 %v92_v61 }
  0x4d   :  { %174 = vpow2.f32 %v94_v62 }
  0x56   :  { %v173_v63 = vpop.eup %172 }
  0x57   :  { %v175_v0 = vpop.eup %174  ;;  %v96_v1 = vmax.f32 %v173_v63, 1e-07 }
  0x58   :  { %v97_v2 = vmax.f32 %v175_v0, 1e-07 }
  0x59   :  { %v98_v3 = vmin.f32 %v96_v1, 0.9999999 }
  0x5a   :  { %v99_v4 = vmin.f32 %v97_v2, 0.9999999 }
  0x5b   :  { %v100_v5 = vsub.f32 1.0, %v98_v3 }
  0x5c   :  { %v101_v6 = vsub.f32 1.0, %v99_v4 }
  0x5d   :  { %v102_v12 = vmul.f32 %v100_v5, %v100_v5 }
  0x5e   :  { %v103_v13 = vmul.f32 %v101_v6, %v101_v6 }
  0x5f   :  { %v104_v19 = vsub.f32 0.0, %v102_v12 }
  0x60   :  { %v105_v21 = vsub.f32 0.0, %v103_v13 }
  0x61   :  { %v106_v28 = vmul.f32 %v104_v19, %v90_v59 }
  0x62   :  { %v107_v23 = vmul.f32 %v105_v21, %v91_v60 }
  0x93   :  { %v112_v7 = vpop.permute.xlu0 %111 }
  0x94   :  { %v114_v8 = vsel %vm74_vm0, %v112_v7, 0.0  ;;  %v115_v9 = vsel %vm75_vm1, %v112_v7, 0.0 }
  0x95   :  { %v116_v10 = vrot.slane %v114_v8, 4  ;;  %v122_v11 = vrot.slane %v115_v9, 4 }
  0x97   :  { %v117_v14 = vadd.f32 %v116_v10, %v114_v8  ;;  %v123_v15 = vadd.f32 %v122_v11, %v115_v9 }
  0x99   :  { %v118_v17 = vrot.slane %v117_v14, 2  ;;  %v124_v18 = vrot.slane %v123_v15, 2 }
  0x9b   :  { %v119_v22 = vadd.f32 %v118_v17, %v117_v14  ;;  %v125_v24 = vadd.f32 %v124_v18, %v123_v15 }
  0x9d   :  { %v120_v26 = vrot.slane %v119_v22, 1  ;;  %v126_v27 = vrot.slane %v125_v24, 1 }
  0x9f   :  { %v121_v29 = vadd.f32 %v120_v26, %v119_v22  ;;  %v127_v30 = vadd.f32 %v126_v27, %v125_v24 }
  0xa1   :  { %v128_v31 = vmul.f32 %v121_v29, %v106_v28  ;;  %v129_v32 = vmul.f32 %v127_v30, %v107_v23 }
  0xa3   :  { %v140_v33 = vsel %vm138_vm2, %v129_v32, 0.0 }
  0xa4   :  { %v143_v20 = vadd.f32 %v140_v33, %v128_v31 }
  0xa6   :  { %144 = vst [vmem:[#allocation5] sm:$0x1] %v143_v20 }
  0xa7   :  { %209 = shalt.err (!%p206_p12)
}
  0xa8   :  { %s210_s4 = scalar_lea.hbm %s286_s3, 16 }
  0xa9   :  { %p211_p13 = scmp.ne.s32.totalorder %s286_s3, %s210_s4  ;;  %p214_p0 = scmp.lt.u32.totalorder %s210_s4, %s286_s3 }
  0xab   :  { %p216_p1 = pnand %p214_p0, %p211_p13 }
  0xad   :  { %219 = shalt.err (!%p216_p1)
}
  0xae   :  { %154 = dma.vmem_to_hbm [thread:$0]  %s152_s26, 16, %s286_s3, [#allocation4]  }
  0xaf   :  { %222 = dma.done.wait [#allocation4], 16  }
  0xb0   :  { %223 = vsyncadd [#allocation4], 4294967280 }
  0xb1   :  { %158 = vsyncpa [#allocation3], 1 }
  0xb2   :  { %159 = vsyncpa [#allocation4], 1 }

</bundles_post_ra>
